<compile_context>
chip_gen: v6e
topology: v6e:2x2x1
jax: 0.10.0
libtpu: 0.0.40
codegen_flags: <defaults>
</compile_context>

<pallas_src>
from functools import partial

import numpy as np
import jax
import jax.numpy as jnp
from jax import lax
from jax.experimental import pallas as pl
from jax.experimental.pallas import tpu as pltpu  # noqa: F401  (TPU backend assumed)

# ----------------------------- config (small, synthetic) ------------------------
F_DIM = 16            # num_features
H_DIM = 32            # hidden_size
N_REL = 4             # num_relations
N_BASES = 30          # num_bases
N_CLASSES = 6         # num_classes
SEQ_LENGTHS = (5, 3)  # per-conversation lengths (static); N = 8, T = 5

D_PAD = 128           # emotions dim (F+H=48) padded to a full lane tile
NEG_BIG = -1e9        # bias for padded class lanes (NOT -inf: avoids 0*inf NaNs)


def _round_up(v, m):
    return (v + m - 1) // m * m


# ----------------------------- fused Pallas kernel -------------------------------
def _make_fused_kernel(dims, doffs, woffs):
    F, H, R, N, BT, Dp, Cp, Nv = dims
    RH = R * H
    f32 = jnp.float32
    DN_TS = (((1,), (1,)), ((), ()))        # contract (t,d) x (s,d) -> (t,s)

    def kernel(d_ref, w_ref, out_ref):
        # -------- packed runtime data (single slab) --------
        x_wide = d_ref[doffs['x']:doffs['x'] + N, :]          # (N, Dp): x at lanes [0, F)
        x = x_wide[:, 0:F]
        a0 = doffs['a']
        a_list = [d_ref[a0 + r * N:a0 + (r + 1) * N, 0:N] for r in range(R)]
        mbd = d_ref[doffs['m']:doffs['m'] + BT, 0:BT]         # block-diag key mask (BT, BT)

        def wrow(name, rows, cols):
            r0 = woffs[name]
            return w_ref[r0:r0 + rows, 0:cols]

        # -------- RGCNConv (mean aggregation, basis-combined weights) --------
        # one lane-dense feature transform: x @ [W_0 | ... | W_{R-1} | root]
        xw = jnp.dot(x, wrow('wcat', F, RH + H), preferred_element_type=f32)   # (N, RH+H)
        a_sum = a_list[0]
        msg = jnp.dot(a_list[0], xw[:, 0:H], preferred_element_type=f32)
        for r in range(1, R):                                 # static unroll, tiny (N,N) LHS
            a_sum = a_sum + a_list[r]
            msg = msg + jnp.dot(a_list[r], xw[:, r * H:(r + 1) * H],
                                preferred_element_type=f32)
        deg = jnp.sum(a_sum, axis=-1, keepdims=True)          # total in-degree
        deg_inv = 1.0 / jnp.maximum(deg, 1.0)                 # exact on purpose (tolerance)
        h1 = msg * deg_inv + xw[:, RH:RH + H] + wrow('rbias', 1, H)            # (N, H)

        # -------- GraphConv (add aggregation); both transforms in one matmul.
        # Weight columns pre-placed at emotion lane offset F, so the [x | h2]
        # concat below is a plain vector add (no masked stores / identity matmuls).
        h1g = jnp.dot(h1, wrow('gwc', H, 2 * Dp), preferred_element_type=f32)  # (N, 2*Dp)
        h2_wide = (jnp.dot(a_sum, h1g[:, 0:Dp], preferred_element_type=f32)
                   + h1g[:, Dp:2 * Dp]
                   + wrow('glb', 1, Dp))                      # h2 lives at lanes [F, F+H)
        emo = x_wide + h2_wide                                # (N, Dp) == [x | h2 | 0...]

        # -------- scatter nodes into padded (conversation, time) rows --------
        e_slab = jnp.dot(wrow('smat', BT, N), emo, preferred_element_type=f32)  # (BT, Dp)

        # -------- MatchingAttention('general2'): all conversations fused.
        # Cross-conversation / padded keys get score tanh(0)=0 -> exp(0)=1 and are
        # cancelled exactly by the mask renormalization (same as PyTorch masking).
        q = (jnp.dot(e_slab, wrow('wt', Dp, Dp), preferred_element_type=f32)
             + wrow('bt', 1, Dp))
        scores = lax.dot_general(q, e_slab, DN_TS, preferred_element_type=f32)  # (BT, BT)
        scores = jnp.tanh(scores * mbd)
        ex = jnp.exp(scores)                                  # tanh-bounded: no max-shift
        # approx reciprocal (EUP slot): per-row scale error cancels in the exact renorm
        alpha = ex * pl.reciprocal(jnp.sum(ex, axis=-1, keepdims=True), approx=True)
        alpha = alpha * mbd
        alpha = alpha / jnp.sum(alpha, axis=-1, keepdims=True)   # exact renormalization
        att = jnp.dot(alpha, e_slab, preferred_element_type=f32)                # (BT, Dp)

        # -------- linear + ReLU + smax_fc + log_softmax.
        # Padded class lanes: zero weight columns + NEG_BIG bias -> exp underflows
        # to 0, so log_softmax over the real classes is unchanged.
        # TODO(synk): nn.Dropout treated as eval-mode identity (no stochastic drop).
        hidden = jnp.maximum(
            jnp.dot(att, wrow('wl', Dp, H), preferred_element_type=f32)
            + wrow('bl', 1, H), 0.0)
        logits = (jnp.dot(hidden, wrow('ws', H, Cp), preferred_element_type=f32)
                  + wrow('bs', 1, Cp))                        # (BT, Cp)
        lmax = jnp.max(logits, axis=-1, keepdims=True)
        lse = jnp.log(jnp.sum(jnp.exp(logits - lmax), axis=-1, keepdims=True)) + lmax
        logp = logits - lse

        # -------- flat gather of valid rows (node-major); single lane-dense store
        out_ref[...] = jnp.dot(wrow('gmat', Nv, BT), logp, preferred_element_type=f32)

    return kernel


# ----------------------------- packing helpers ------------------------------------
def _pack_rows(named_blocks, width):
    """Pack 2-D blocks into one (rows, width) f32 slab.  Each block is zero-padded
    to `width` lanes and to a multiple of 8 rows so every row offset is
    sublane-aligned.  Returns (slab, {name: row_offset})."""
    offs, parts, r = {}, [], 0
    for name, a in named_blocks:
        a = jnp.asarray(a, jnp.float32)
        nr = _round_up(a.shape[0], 8)
        offs[name] = r
        parts.append(jnp.pad(a, ((0, nr - a.shape[0]), (0, width - a.shape[1]))))
        r += nr
    return jnp.concatenate(parts, axis=0), offs


def _build_scatter_gather(seq_lengths, n_nodes, t_pad):
    """S (B*Tp, N): node -> padded (conv, time) row; G (Nv, B*Tp): padded row -> output row."""
    B = len(seq_lengths)
    n_valid = int(sum(seq_lengths))
    starts = np.concatenate([[0], np.cumsum(seq_lengths)[:-1]]).astype(np.int64)
    S = np.zeros((B * t_pad, n_nodes), np.float32)
    G = np.zeros((n_valid, B * t_pad), np.float32)
    row = 0
    for b, (s0, l) in enumerate(zip(starts.tolist(), list(seq_lengths))):
        for t in range(l):
            S[b * t_pad + t, s0 + t] = 1.0
            G[row, b * t_pad + t] = 1.0
            row += 1
    return S, G


# ----------------------------- full forward (glue + fused kernel) ----------------
@partial(jax.jit, static_argnames=('seq_lengths', 'nodal_attn', 'avec'))
def graph_network_forward(params, x, edge_index, edge_norm, edge_type,
                          seq_lengths, umask, nodal_attn=True, avec=False):
    # edge_norm accepted but unused — matches the PyTorch forward (conv1 called without it).
    del edge_norm
    if (not nodal_attn) or avec:
        # TODO(synk): only the nodal_attn=True / avec=False branch is implemented.
        raise NotImplementedError("nodal_attn=False / avec=True branches not implemented")

    N, F = x.shape
    R = params['rgcn_att'].shape[0]
    H = params['rgcn_root'].shape[1]
    D = F + H
    C = params['smax_w'].shape[1]
    B = len(seq_lengths)
    T = max(seq_lengths)
    Tp = _round_up(T, 8)                 # sublane-aligned conversation rows
    BT = B * Tp
    Dp = D_PAD                           # lane-dense emotions width
    Cp = _round_up(C, 128)               # lane-dense classifier / output width
    Nv = int(sum(seq_lengths))
    WSLAB_W = 2 * Dp                     # widest weight block (merged GraphConv weight)

    # ---- dense per-relation adjacency, row-stacked: a_stk[r*N + i, j] = #edges(j->i, rel r)
    src, dst = edge_index[0], edge_index[1]
    A = jnp.zeros((R, N, N), jnp.float32).at[edge_type, dst, src].add(1.0)
    a_stk = A.reshape(R * N, N)

    # ---- block-diagonal key mask for the fused (B*Tp) attention slab
    m_pad = jnp.zeros((B, Tp), jnp.float32).at[:, :T].set(umask.astype(jnp.float32))
    blk = np.kron(np.eye(B, dtype=np.float32), np.ones((Tp, Tp), np.float32))
    mbd = jnp.asarray(blk) * m_pad.reshape(1, BT)

    # ---- packed runtime-data slab (one DMA)
    x_wide = jnp.pad(x.astype(jnp.float32), ((0, 0), (0, Dp - F)))
    dslab, doffs = _pack_rows([('x', x_wide), ('a', a_stk), ('m', mbd)], Dp)

    # ---- packed parameter / static slab (one DMA)
    W_rel = jnp.einsum('rb,bfh->rfh', params['rgcn_att'], params['rgcn_basis'])   # (R,F,H)
    wcat = jnp.concatenate([jnp.transpose(W_rel, (1, 0, 2)).reshape(F, R * H),
                            params['rgcn_root']], axis=1)                         # (F, R*H+H)
    gwc = jnp.zeros((H, 2 * Dp), jnp.float32)
    gwc = gwc.at[:, F:F + H].set(params['gc_weight'])           # conv part -> lanes [F, F+H)
    gwc = gwc.at[:, Dp + F:Dp + F + H].set(params['gc_lin_w'])  # lin  part -> same lanes, 2nd half
    glb = jnp.zeros((1, Dp), jnp.float32).at[0, F:F + H].set(params['gc_lin_b'])
    wt = jnp.zeros((Dp, Dp), jnp.float32).at[:D, :D].set(params['matchatt_w'])
    bt = jnp.zeros((1, Dp), jnp.float32).at[0, :D].set(params['matchatt_b'])
    wl = jnp.zeros((Dp, H), jnp.float32).at[:D, :].set(params['lin_w'])
    bl = params['lin_b'].reshape(1, H)
    ws = jnp.zeros((H, Cp), jnp.float32).at[:, :C].set(params['smax_w'])
    bs = jnp.full((1, Cp), NEG_BIG, jnp.float32).at[0, :C].set(params['smax_b'])
    rbias = params['rgcn_bias'].reshape(1, H)
    S_np, G_np = _build_scatter_gather(seq_lengths, N, Tp)

    wslab, woffs = _pack_rows(
        [('wcat', wcat), ('gwc', gwc), ('wt', wt), ('wl', wl), ('ws', ws),
         ('smat', S_np), ('gmat', G_np),
         ('rbias', rbias), ('glb', glb), ('bt', bt), ('bl', bl), ('bs', bs)],
        WSLAB_W)

    kernel = _make_fused_kernel((F, H, R, N, BT, Dp, Cp, Nv), doffs, woffs)

    # NOTE(scaling): for non-toy N, tile the adjacency over the destination-node axis
    # with a BlockSpec grid (parallel axis -> second v7x TensorCore) and set
    # pltpu.CompilerParams(vmem_limit_bytes=...); at this size one ungridded
    # VMEM-resident invocation with 2 input DMAs is fastest.
    out_pad = pl.pallas_call(
        kernel,
        out_shape=jax.ShapeDtypeStruct((Nv, Cp), jnp.float32),
    )(dslab, wslab)

    # Padded class lanes carry ~NEG_BIG log-probs; this slice must be kept.
    return out_pad[:, :C]


# ----------------------------- deterministic parameter init ----------------------
def init_params(key):
    ks = jax.random.split(key, 13)
    D = F_DIM + H_DIM

    def w(k, shape, scale=0.1):
        return jax.random.normal(k, shape, jnp.float32) * scale

    return dict(
        rgcn_basis=w(ks[0], (N_BASES, F_DIM, H_DIM)),
        rgcn_att=w(ks[1], (N_REL, N_BASES)),
        rgcn_root=w(ks[2], (F_DIM, H_DIM)),
        rgcn_bias=w(ks[3], (H_DIM,)),
        gc_weight=w(ks[4], (H_DIM, H_DIM)),
        gc_lin_w=w(ks[5], (H_DIM, H_DIM)),
        gc_lin_b=w(ks[6], (H_DIM,)),
        matchatt_w=w(ks[7], (D, D)),
        matchatt_b=w(ks[8], (D,)),
        lin_w=w(ks[9], (D, H_DIM)),
        lin_b=w(ks[10], (H_DIM,)),
        smax_w=w(ks[11], (H_DIM, N_CLASSES)),
        smax_b=w(ks[12], (N_CLASSES,)),
    )


# ----------------------------- pure-JAX reference (sanity check) -----------------
def _pad_and_stack_ref(emotions, seq_lengths):
    T, Dd = max(seq_lengths), emotions.shape[1]
    starts = np.concatenate([[0], np.cumsum(seq_lengths)[:-1]])
    rows = []
    for s, l in zip(starts.tolist(), list(seq_lengths)):
        seg = emotions[s:s + l]
        if l < T:
            seg = jnp.concatenate([seg, jnp.zeros((T - l, Dd), jnp.float32)], 0)
        rows.append(seg)
    return jnp.stack(rows, 0)   # (B, T, D)


def reference_forward(params, x, A, seq_lengths, umask):
    deg = jnp.sum(A, axis=(0, 2))
    deg_inv = 1.0 / jnp.maximum(deg, 1.0)
    A_sum = jnp.sum(A, axis=0)
    W_rel = jnp.einsum('rb,bfh->rfh', params['rgcn_att'], params['rgcn_basis'])
    msg = jnp.einsum('rij,jf,rfh->ih', A, x, W_rel)
    h1 = msg * deg_inv[:, None] + x @ params['rgcn_root'] + params['rgcn_bias']
    h2 = A_sum @ (h1 @ params['gc_weight']) + h1 @ params['gc_lin_w'] + params['gc_lin_b']
    emotions = jnp.concatenate([x, h2], axis=-1)

    E = _pad_and_stack_ref(emotions, seq_lengths)   # (B, T, D)
    m = umask.astype(jnp.float32)
    q = jnp.einsum('btd,de->bte', E, params['matchatt_w']) + params['matchatt_b']
    Em = E * m[:, :, None]
    scores = jnp.einsum('btd,bsd->bts', q, Em)
    scores = jnp.tanh(scores * m[:, None, :])
    alpha = jax.nn.softmax(scores, -1) * m[:, None, :]
    alpha = alpha / jnp.sum(alpha, -1, keepdims=True)
    att = jnp.einsum('bts,bsd->btd', alpha, E)
    hidden = jax.nn.relu(jnp.einsum('btd,dh->bth', att, params['lin_w']) + params['lin_b'])
    logits = jnp.einsum('bth,hc->btc', hidden, params['smax_w']) + params['smax_b']
    logp = jax.nn.log_softmax(logits, -1)
    return jnp.concatenate([logp[j, :seq_lengths[j], :] for j in range(len(seq_lengths))], 0)


# ----------------------------- main ----------------------------------------------
if __name__ == "__main__":
    key = jax.random.PRNGKey(0)
    kp, kx, ke = jax.random.split(key, 3)
    params = init_params(kp)

    N = int(sum(SEQ_LENGTHS))
    x = jax.random.normal(kx, (N, F_DIM), jnp.float32)

    # edges: all ordered pairs within each conversation (no self-loops)
    src_l, dst_l = [], []
    off = 0
    for l in SEQ_LENGTHS:
        for i in range(l):
            for j in range(l):
                if i != j:
                    src_l.append(off + j)   # message source
                    dst_l.append(off + i)   # message target
        off += l
    E_num = len(src_l)
    edge_index = jnp.array([src_l, dst_l], dtype=jnp.int32)
    edge_type = jax.random.randint(ke, (E_num,), 0, N_REL, dtype=jnp.int32)
    edge_norm = jnp.ones((E_num,), jnp.float32)   # unused (matches PyTorch forward)

    B, T = len(SEQ_LENGTHS), max(SEQ_LENGTHS)
    umask = (jnp.arange(T)[None, :] < jnp.array(SEQ_LENGTHS)[:, None]).astype(jnp.float32)

    out = graph_network_forward(params, x, edge_index, edge_norm, edge_type,
                                SEQ_LENGTHS, umask, nodal_attn=True, avec=False)
    out = jax.block_until_ready(out)

    # sanity check against a pure-JAX reference (confirms the block-diagonal key-mask
    # fusion and the approx-reciprocal cancellation are exact within tolerance)
    A = jnp.zeros((N_REL, N, N), jnp.float32).at[
        edge_type, edge_index[1], edge_index[0]].add(1.0)
    ref = reference_forward(params, x, A, SEQ_LENGTHS, umask)
    assert out.shape == (N, N_CLASSES)
    np.testing.assert_allclose(np.asarray(out), np.asarray(ref), rtol=1e-4, atol=1e-4)

    print("KERNEL_OK")
</pallas_src>

<mosaic_0001>
module attributes {stable_mosaic.version = 11 : i64} {
  func.func @kernel(%arg0: memref<56x128xf32, #tpu.memory_space<vmem>>, %arg1: memref<400x256xf32, #tpu.memory_space<vmem>>, %arg2: memref<8x128xf32, #tpu.memory_space<vmem>>) attributes {dimension_semantics = [], scalar_prefetch = 0 : i64, scratch_operands = 0 : i64, tpu.core_type = #tpu.core_type<tc>} {
    %c0 = arith.constant 0 : index
    %c0_0 = arith.constant 0 : index
    %0 = vector.load %arg0[%c0, %c0_0] : memref<56x128xf32, #tpu.memory_space<vmem>>, vector<8x128xf32>
    %1 = vector.extract_strided_slice %0 {offsets = [0, 0], sizes = [8, 16], strides = [1, 1]} : vector<8x128xf32> to vector<8x16xf32>
    %c8 = arith.constant 8 : index
    %c0_1 = arith.constant 0 : index
    %2 = vector.load %arg0[%c8, %c0_1] : memref<56x128xf32, #tpu.memory_space<vmem>>, vector<8x8xf32>
    %c16 = arith.constant 16 : index
    %c0_2 = arith.constant 0 : index
    %3 = vector.load %arg0[%c16, %c0_2] : memref<56x128xf32, #tpu.memory_space<vmem>>, vector<8x8xf32>
    %c24 = arith.constant 24 : index
    %c0_3 = arith.constant 0 : index
    %4 = vector.load %arg0[%c24, %c0_3] : memref<56x128xf32, #tpu.memory_space<vmem>>, vector<8x8xf32>
    %c32 = arith.constant 32 : index
    %c0_4 = arith.constant 0 : index
    %5 = vector.load %arg0[%c32, %c0_4] : memref<56x128xf32, #tpu.memory_space<vmem>>, vector<8x8xf32>
    %c40 = arith.constant 40 : index
    %c0_5 = arith.constant 0 : index
    %6 = vector.load %arg0[%c40, %c0_5] : memref<56x128xf32, #tpu.memory_space<vmem>>, vector<16x16xf32>
    %c0_6 = arith.constant 0 : index
    %c0_7 = arith.constant 0 : index
    %7 = vector.load %arg1[%c0_6, %c0_7] : memref<400x256xf32, #tpu.memory_space<vmem>>, vector<16x160xf32>
    %cst = arith.constant dense<0.000000e+00> : vector<8x160xf32>
    %8 = tpu.matmul %1, %7, %cst {dimension_numbers = #tpu.dot_dimension_numbers<[1], [0], [0], [1], [0, 0, 1, 1], [], []>} : vector<8x16xf32>, vector<16x160xf32>, vector<8x160xf32> -> vector<8x160xf32>
    %9 = vector.extract_strided_slice %8 {offsets = [0, 0], sizes = [8, 32], strides = [1, 1]} : vector<8x160xf32> to vector<8x32xf32>
    %cst_8 = arith.constant dense<0.000000e+00> : vector<8x32xf32>
    %10 = tpu.matmul %2, %9, %cst_8 {dimension_numbers = #tpu.dot_dimension_numbers<[1], [0], [0], [1], [0, 0, 1, 1], [], []>} : vector<8x8xf32>, vector<8x32xf32>, vector<8x32xf32> -> vector<8x32xf32>
    %11 = arith.addf %2, %3 : vector<8x8xf32>
    %12 = vector.extract_strided_slice %8 {offsets = [0, 32], sizes = [8, 32], strides = [1, 1]} : vector<8x160xf32> to vector<8x32xf32>
    %cst_9 = arith.constant dense<0.000000e+00> : vector<8x32xf32>
    %13 = tpu.matmul %3, %12, %cst_9 {dimension_numbers = #tpu.dot_dimension_numbers<[1], [0], [0], [1], [0, 0, 1, 1], [], []>} : vector<8x8xf32>, vector<8x32xf32>, vector<8x32xf32> -> vector<8x32xf32>
    %14 = arith.addf %10, %13 : vector<8x32xf32>
    %15 = arith.addf %11, %4 : vector<8x8xf32>
    %16 = vector.extract_strided_slice %8 {offsets = [0, 64], sizes = [8, 32], strides = [1, 1]} : vector<8x160xf32> to vector<8x32xf32>
    %cst_10 = arith.constant dense<0.000000e+00> : vector<8x32xf32>
    %17 = tpu.matmul %4, %16, %cst_10 {dimension_numbers = #tpu.dot_dimension_numbers<[1], [0], [0], [1], [0, 0, 1, 1], [], []>} : vector<8x8xf32>, vector<8x32xf32>, vector<8x32xf32> -> vector<8x32xf32>
    %18 = arith.addf %14, %17 : vector<8x32xf32>
    %19 = arith.addf %15, %5 : vector<8x8xf32>
    %20 = vector.extract_strided_slice %8 {offsets = [0, 96], sizes = [8, 32], strides = [1, 1]} : vector<8x160xf32> to vector<8x32xf32>
    %cst_11 = arith.constant dense<0.000000e+00> : vector<8x32xf32>
    %21 = tpu.matmul %5, %20, %cst_11 {dimension_numbers = #tpu.dot_dimension_numbers<[1], [0], [0], [1], [0, 0, 1, 1], [], []>} : vector<8x8xf32>, vector<8x32xf32>, vector<8x32xf32> -> vector<8x32xf32>
    %22 = arith.addf %18, %21 : vector<8x32xf32>
    %cst_12 = arith.constant dense<0.000000e+00> : vector<8xf32>
    %23 = vector.multi_reduction <add>, %19, %cst_12 [1] : vector<8x8xf32> to vector<8xf32>
    %24 = vector.shape_cast %23 : vector<8xf32> to vector<8x1xf32>
    %cst_13 = arith.constant 1.000000e+00 : f32
    %25 = vector.broadcast %cst_13 : f32 to vector<8x1xf32>
    %26 = arith.maximumf %24, %25 : vector<8x1xf32>
    %cst_14 = arith.constant 1.000000e+00 : f32
    %27 = vector.broadcast %cst_14 : f32 to vector<8x1xf32>
    %28 = arith.divf %27, %26 : vector<8x1xf32>
    %29 = vector.broadcast %28 : vector<8x1xf32> to vector<8x32xf32>
    %30 = arith.mulf %22, %29 : vector<8x32xf32>
    %31 = vector.extract_strided_slice %8 {offsets = [0, 128], sizes = [8, 32], strides = [1, 1]} : vector<8x160xf32> to vector<8x32xf32>
    %32 = arith.addf %30, %31 : vector<8x32xf32>
    %c360 = arith.constant 360 : index
    %c0_15 = arith.constant 0 : index
    %33 = vector.load %arg1[%c360, %c0_15] : memref<400x256xf32, #tpu.memory_space<vmem>>, vector<1x32xf32>
    %34 = vector.broadcast %33 : vector<1x32xf32> to vector<8x32xf32>
    %35 = arith.addf %32, %34 : vector<8x32xf32>
    %c16_16 = arith.constant 16 : index
    %c0_17 = arith.constant 0 : index
    %36 = vector.load %arg1[%c16_16, %c0_17] : memref<400x256xf32, #tpu.memory_space<vmem>>, vector<32x256xf32>
    %cst_18 = arith.constant dense<0.000000e+00> : vector<8x256xf32>
    %37 = tpu.matmul %35, %36, %cst_18 {dimension_numbers = #tpu.dot_dimension_numbers<[1], [0], [0], [1], [0, 0, 1, 1], [], []>} : vector<8x32xf32>, vector<32x256xf32>, vector<8x256xf32> -> vector<8x256xf32>
    %38 = vector.extract_strided_slice %37 {offsets = [0, 0], sizes = [8, 128], strides = [1, 1]} : vector<8x256xf32> to vector<8x128xf32>
    %cst_19 = arith.constant dense<0.000000e+00> : vector<8x128xf32>
    %39 = tpu.matmul %19, %38, %cst_19 {dimension_numbers = #tpu.dot_dimension_numbers<[1], [0], [0], [1], [0, 0, 1, 1], [], []>} : vector<8x8xf32>, vector<8x128xf32>, vector<8x128xf32> -> vector<8x128xf32>
    %40 = vector.extract_strided_slice %37 {offsets = [0, 128], sizes = [8, 128], strides = [1, 1]} : vector<8x256xf32> to vector<8x128xf32>
    %41 = arith.addf %39, %40 : vector<8x128xf32>
    %c368 = arith.constant 368 : index
    %c0_20 = arith.constant 0 : index
    %42 = vector.load %arg1[%c368, %c0_20] : memref<400x256xf32, #tpu.memory_space<vmem>>, vector<1x128xf32>
    %43 = vector.broadcast %42 : vector<1x128xf32> to vector<8x128xf32>
    %44 = arith.addf %41, %43 : vector<8x128xf32>
    %45 = arith.addf %0, %44 : vector<8x128xf32>
    %c336 = arith.constant 336 : index
    %c0_21 = arith.constant 0 : index
    %46 = vector.load %arg1[%c336, %c0_21] : memref<400x256xf32, #tpu.memory_space<vmem>>, vector<16x8xf32>
    %cst_22 = arith.constant dense<0.000000e+00> : vector<16x128xf32>
    %47 = tpu.matmul %46, %45, %cst_22 {dimension_numbers = #tpu.dot_dimension_numbers<[1], [0], [0], [1], [0, 0, 1, 1], [], []>} : vector<16x8xf32>, vector<8x128xf32>, vector<16x128xf32> -> vector<16x128xf32>
    %c48 = arith.constant 48 : index
    %c0_23 = arith.constant 0 : index
    %48 = vector.load %arg1[%c48, %c0_23] : memref<400x256xf32, #tpu.memory_space<vmem>>, vector<128x128xf32>
    %cst_24 = arith.constant dense<0.000000e+00> : vector<16x128xf32>
    %49 = tpu.matmul %47, %48, %cst_24 {dimension_numbers = #tpu.dot_dimension_numbers<[1], [0], [0], [1], [0, 0, 1, 1], [], []>} : vector<16x128xf32>, vector<128x128xf32>, vector<16x128xf32> -> vector<16x128xf32>
    %c376 = arith.constant 376 : index
    %c0_25 = arith.constant 0 : index
    %50 = vector.load %arg1[%c376, %c0_25] : memref<400x256xf32, #tpu.memory_space<vmem>>, vector<1x128xf32>
    %51 = vector.broadcast %50 : vector<1x128xf32> to vector<16x128xf32>
    %52 = arith.addf %49, %51 : vector<16x128xf32>
    %cst_26 = arith.constant dense<0.000000e+00> : vector<16x16xf32>
    %53 = tpu.matmul %52, %47, %cst_26 {dimension_numbers = #tpu.dot_dimension_numbers<[1], [1], [0], [0], [0, 0, 1, 0], [], []>} : vector<16x128xf32>, vector<16x128xf32>, vector<16x16xf32> -> vector<16x16xf32>
    %54 = arith.mulf %53, %6 : vector<16x16xf32>
    %55 = math.tanh %54 : vector<16x16xf32>
    %56 = math.exp %55 : vector<16x16xf32>
    %cst_27 = arith.constant dense<0.000000e+00> : vector<16xf32>
    %57 = vector.multi_reduction <add>, %56, %cst_27 [1] : vector<16x16xf32> to vector<16xf32>
    %58 = vector.shape_cast %57 : vector<16xf32> to vector<16x1xf32>
    %59 = tpu.reciprocal %58 {approx = true} : vector<16x1xf32> -> vector<16x1xf32>
    %60 = vector.broadcast %59 : vector<16x1xf32> to vector<16x16xf32>
    %61 = arith.mulf %56, %60 : vector<16x16xf32>
    %62 = arith.mulf %61, %6 : vector<16x16xf32>
    %cst_28 = arith.constant dense<0.000000e+00> : vector<16xf32>
    %63 = vector.multi_reduction <add>, %62, %cst_28 [1] : vector<16x16xf32> to vector<16xf32>
    %64 = vector.shape_cast %63 : vector<16xf32> to vector<16x1xf32>
    %65 = vector.broadcast %64 : vector<16x1xf32> to vector<16x16xf32>
    %66 = arith.divf %62, %65 : vector<16x16xf32>
    %cst_29 = arith.constant dense<0.000000e+00> : vector<16x128xf32>
    %67 = tpu.matmul %66, %47, %cst_29 {dimension_numbers = #tpu.dot_dimension_numbers<[1], [0], [0], [1], [0, 0, 1, 1], [], []>} : vector<16x16xf32>, vector<16x128xf32>, vector<16x128xf32> -> vector<16x128xf32>
    %c176 = arith.constant 176 : index
    %c0_30 = arith.constant 0 : index
    %68 = vector.load %arg1[%c176, %c0_30] : memref<400x256xf32, #tpu.memory_space<vmem>>, vector<128x32xf32>
    %cst_31 = arith.constant dense<0.000000e+00> : vector<16x32xf32>
    %69 = tpu.matmul %67, %68, %cst_31 {dimension_numbers = #tpu.dot_dimension_numbers<[1], [0], [0], [1], [0, 0, 1, 1], [], []>} : vector<16x128xf32>, vector<128x32xf32>, vector<16x32xf32> -> vector<16x32xf32>
    %c384 = arith.constant 384 : index
    %c0_32 = arith.constant 0 : index
    %70 = vector.load %arg1[%c384, %c0_32] : memref<400x256xf32, #tpu.memory_space<vmem>>, vector<1x32xf32>
    %71 = vector.broadcast %70 : vector<1x32xf32> to vector<16x32xf32>
    %72 = arith.addf %69, %71 : vector<16x32xf32>
    %cst_33 = arith.constant 0.000000e+00 : f32
    %73 = vector.broadcast %cst_33 : f32 to vector<16x32xf32>
    %74 = arith.maximumf %72, %73 : vector<16x32xf32>
    %c304 = arith.constant 304 : index
    %c0_34 = arith.constant 0 : index
    %75 = vector.load %arg1[%c304, %c0_34] : memref<400x256xf32, #tpu.memory_space<vmem>>, vector<32x128xf32>
    %cst_35 = arith.constant dense<0.000000e+00> : vector<16x128xf32>
    %76 = tpu.matmul %74, %75, %cst_35 {dimension_numbers = #tpu.dot_dimension_numbers<[1], [0], [0], [1], [0, 0, 1, 1], [], []>} : vector<16x32xf32>, vector<32x128xf32>, vector<16x128xf32> -> vector<16x128xf32>
    %c392 = arith.constant 392 : index
    %c0_36 = arith.constant 0 : index
    %77 = vector.load %arg1[%c392, %c0_36] : memref<400x256xf32, #tpu.memory_space<vmem>>, vector<1x128xf32>
    %78 = vector.broadcast %77 : vector<1x128xf32> to vector<16x128xf32>
    %79 = arith.addf %76, %78 : vector<16x128xf32>
    %cst_37 = arith.constant dense<0xFF800000> : vector<16xf32>
    %80 = vector.multi_reduction <maximumf>, %79, %cst_37 [1] : vector<16x128xf32> to vector<16xf32>
    %81 = vector.shape_cast %80 : vector<16xf32> to vector<16x1xf32>
    %82 = vector.broadcast %81 : vector<16x1xf32> to vector<16x128xf32>
    %83 = arith.subf %79, %82 : vector<16x128xf32>
    %84 = math.exp %83 : vector<16x128xf32>
    %cst_38 = arith.constant dense<0.000000e+00> : vector<16xf32>
    %85 = vector.multi_reduction <add>, %84, %cst_38 [1] : vector<16x128xf32> to vector<16xf32>
    %86 = vector.shape_cast %85 : vector<16xf32> to vector<16x1xf32>
    %87 = math.log %86 : vector<16x1xf32>
    %88 = arith.addf %87, %81 : vector<16x1xf32>
    %89 = vector.broadcast %88 : vector<16x1xf32> to vector<16x128xf32>
    %90 = arith.subf %79, %89 : vector<16x128xf32>
    %c352 = arith.constant 352 : index
    %c0_39 = arith.constant 0 : index
    %91 = vector.load %arg1[%c352, %c0_39] : memref<400x256xf32, #tpu.memory_space<vmem>>, vector<8x16xf32>
    %cst_40 = arith.constant dense<0.000000e+00> : vector<8x128xf32>
    %92 = tpu.matmul %91, %90, %cst_40 {dimension_numbers = #tpu.dot_dimension_numbers<[1], [0], [0], [1], [0, 0, 1, 1], [], []>} : vector<8x16xf32>, vector<16x128xf32>, vector<8x128xf32> -> vector<8x128xf32>
    %c0_41 = arith.constant 0 : index
    %c0_42 = arith.constant 0 : index
    %93 = vector.load %arg2[%c0_41, %c0_42] : memref<8x128xf32, #tpu.memory_space<vmem>>, vector<8x128xf32>
    tpu.vector_store %arg2[%c0_41, %c0_42], %92 {strides = array<i32>} : memref<8x128xf32, #tpu.memory_space<vmem>>, vector<8x128xf32>,
    return
  }
}

</mosaic_0001>

<bundles_post_ra>
// kernel: mul.5
= control target key start
LH: loop header
LB: loop body
LE: loop exit
PB: predicated region body
PF: predicated region fallthrough
CT: control target
= control target key end

     0   :  { %vm8_vm0 = vcmask 64512   ;;  %vm14_vm1 = vcmask 130112   ;;  %s42_s0 = inlined_call_operand.vmem [shape: f32[2,8], index: 0, kind: input, shape index: {}]   ;;  %s43_s1 = inlined_call_operand.vmem [shape: f32[16], index: 1, kind: output, shape index: {}]  }
   0x1   :  { %v5_v0 = vld [vmem:[%s42_s0] sm:$0x3]  ;;  %s25_s0 = smov 8  }
   0x2   :  { %6 = vst [vmem:[#allocation1] sm:$0x3] %v5_v0 }
   0x9   :  { %v11_v1 = vld [vmem:[#allocation1 + $0x1] sm:$0x1]   ;;  %v7_v2 = vld [vmem:[#allocation1] sm:$0x1]  }
   0xa   :  { %12 = vrot.lane.b32.xlu0 %v11_v1, %s25_s0  ;;  %9 = vst.msk [vmem:[#allocation0] sm:$0x1] %vm8_vm0, %v7_v2  }
  0x7c   :  { %v13_v3 = vpop.permute.xlu0 %12  }
  0x7d   :  { %15 = vst.msk [vmem:[#allocation0] sm:$0x1] %vm14_vm1, %v13_v3  }
  0x84   :  { %v20_v4 = vld [vmem:[#allocation0] sm:$0x1] }
  0x85   :  { %23 = vst [vmem:[%s43_s1] sm:$0x1] %v20_v4 }

// kernel: graph_network_forward.1
= control target key start
LH: loop header
LB: loop body
LE: loop exit
PB: predicated region body
PF: predicated region fallthrough
CT: control target
= control target key end

     0   :  { %v1493_v4 = vmov 0.0   ;;  %s1750_s0 = inlined_call_operand.vmem [shape: f32[56,128], index: 0, kind: input, shape index: {}]   ;;  %s1751_s1 = inlined_call_operand.vmem [shape: f32[400,256], index: 1, kind: input, shape index: {}]   ;;  %s1752_s2 = inlined_call_operand.hbm [shape: f32[8,128], index: 2, kind: output, shape index: {}]  }
   0x1   :  { %v22_v0 = vld [vmem:[%s1751_s1 + $0x18] sm:$0xff]  ;;  %v21_v1 = vld [vmem:[%s1751_s1 + $0x10] sm:$0xff]  ;;  %v20_v2 = vld [vmem:[%s1751_s1 + $0x8] sm:$0xff]  ;;  %91 = vmatprep.mubr.f32.mxu0 %v1493_v4 }
   0x2   :  { %55 = vmatprep.subr.mxu0 %v22_v0  ;;  %v19_v3 = vld [vmem:[%s1751_s1] sm:$0xff] }
   0x3   :  { %7 = vsyncpa [#allocation3], 0  ;;  %56 = vmatpush1.msra.mxu0 %v21_v1  ;;  %v1530_v5 = vld [vmem:[%s1750_s0] sm:$0xff]  ;;  %vm23_vm0 = vcmask 130048   ;;  %1307 = vmatprep.subr.mxu1 %v1493_v4  ;;  %vm1494_vm1 = vmmov 0   ;;  %s1495_s19 = smov 32  }
   0x4   :  { %57 = vmatprep.subr.mxu0 %v20_v2  ;;  %1309 = vmatprep.mubr.msk.f32.mxu1 %vm1494_vm1, %v1493_v4  ;;  %s1496_s20 = smov 96   ;;  %s1497_s21 = smov 64   ;;  %v13_v7 = vld [vmem:[%s1750_s0 + $0x8] sm:$0xff]  ;;  %v14_v8 = vld [vmem:[%s1750_s0 + $0x10] sm:$0xff]  ;;  %v15_v10 = vld [vmem:[%s1750_s0 + $0x18] sm:$0xff]  ;;  %vm103_vm2 = vcmask 64512  }
   0x5   :  { %58 = vmatpush1.msra.mxu0 %v19_v3  ;;  %v98_v9 = vadd.f32 %v14_v8, %v13_v7  ;;  %v16_v12 = vld [vmem:[%s1750_s0 + $0x20] sm:$0xff]  ;;  %v423_v18 = vld [vmem:[%s1751_s1 + $0x58] sm:$0xff]  ;;  %v422_v19 = vld [vmem:[%s1751_s1 + $0x50] sm:$0xff]  ;;  %vm424_vm3 = vcmask 261120   ;;  %s1498_s24 = smov [#allocation2]  }
   0x6   :  { %1227 = vmatmul.mubr.msk.f32.vlgmr.msra.gmra.mxu0 %vm23_vm0, %v1530_v5  ;;  %1317 = vmatprep.subr.mxu0 %v1493_v4  ;;  %v421_v20 = vld [vmem:[%s1751_s1 + $0x48] sm:$0xff]  ;;  %v420_v21 = vld [vmem:[%s1751_s1 + $0x40] sm:$0xff]  ;;  %v419_v22 = vld [vmem:[%s1751_s1 + $0x38] sm:$0xff]  ;;  %s1219_s25 = sshll.u32 %s1498_s24, 4  ;;  %s1220_s25 = int_to_ptr.vmem [resolvable:$true] %s1219_s25 }
   0x7   :  { %1319 = vmatprep.mubr.msk.f32.mxu0 %vm1494_vm1, %v1493_v4  ;;  %v250_v11 = vadd.f32 %v98_v9, %v15_v10  ;;  %v418_v23 = vld [vmem:[%s1751_s1 + $0x30] sm:$0xff]  ;;  %v417_v24 = vld [vmem:[%s1751_s1 + $0x28] sm:$0xff]  ;;  %v416_v25 = vld [vmem:[%s1751_s1 + $0x20] sm:$0xff]  ;;  %s1471_s26 = scalar_lea.vmem %s1220_s25, 128  ;;  %p1476_p1 = scmp.lt.s32.totalorder %s1220_s25, %s1220_s25 }
   0x8   :  { %v414_v42 = vld [vmem:[%s1751_s1 + $0x2d0] ss:$0 sm:$0xff]  ;;  %v575_v46 = vld [vmem:[%s1751_s1 + $0x2a0] sm:$0xff]  ;;  %p1472_p0 = scmp.ne.s32.totalorder %s1220_s25, %s1471_s26  ;;  %p1477_p2 = scmp.lt.s32.totalorder %s1471_s26, %s1471_s26 }
   0x9   :  { %v328_v13 = vadd.f32 %v250_v11, %v16_v12  ;;  %v673_v47 = vld [vmem:[%s1751_s1 + $0x150] sm:$0xff]  ;;  %v672_v48 = vld [vmem:[%s1751_s1 + $0x140] sm:$0xff] }
   0xa   :  { %v671_v49 = vld [vmem:[%s1751_s1 + $0x130] sm:$0xff]  ;;  %v670_v50 = vld [vmem:[%s1751_s1 + $0x120] sm:$0xff]  ;;  %p1478_p3 = por %p1477_p2, %p1476_p1 }
   0xb   :  { %v406_v14 = vsel %vm103_vm2, %v328_v13, 0.0  ;;  %v669_v51 = vld [vmem:[%s1751_s1 + $0x110] sm:$0xff]  ;;  %v668_v52 = vld [vmem:[%s1751_s1 + $0x100] sm:$0xff] }
   0xc   :  { %v667_v53 = vld [vmem:[%s1751_s1 + $0xf0] sm:$0xff]  ;;  %v666_v54 = vld [vmem:[%s1751_s1 + $0xe0] sm:$0xff]  ;;  %p1479_p4 = pnand %p1478_p3, %p1472_p0 }
   0xd   :  { %v665_v55 = vld [vmem:[%s1751_s1 + $0xd0] sm:$0xff]  ;;  %v664_v56 = vld [vmem:[%s1751_s1 + $0xc0] sm:$0xff] }
   0xe   :  { %v663_v57 = vld [vmem:[%s1751_s1 + $0xb0] sm:$0xff]  ;;  %v662_v58 = vld [vmem:[%s1751_s1 + $0xa0] sm:$0xff] }
   0xf   :  { %v661_v59 = vld [vmem:[%s1751_s1 + $0x90] sm:$0xff]  ;;  %v660_v60 = vld [vmem:[%s1751_s1 + $0x80] sm:$0xff] }
  0x10   :  { %v572_v63 = vld [vmem:[%s1751_s1 + $0x2e0] ss:$0 sm:$0xff]  ;;  %v674_v11 = vld [vmem:[%s1751_s1 + $0x2f0] ss:$0 sm:$0xff] }
  0xc6   :  { %v93_v6 = vpop.f32.mrf.mxu0 }
  0xc7   :  { %329 = vrot.lane.b32.xlu1 %v93_v6, %s1495_s19  ;;  %100 = vrot.lane.b32.xlu0 %v93_v6, %s1496_s20 }
  0xc8   :  { %v95_v29 = vpop.f32.mrf.mxu0 }
  0xcb   :  { %251 = vrot.lane.b32.xlu0 %v93_v6, %s1497_s21 }
  0xeb   :  { %407 = vadd.xlane.f32.xlu1 %v406_v14 }
 0x139   :  { %v101_v15 = vpop.permute.xlu0 %100  ;;  %v330_v17 = vpop.permute.xlu1 %329 }
 0x13a   :  { %1308 = vmatpush3.msra.mxu1 %v101_v15  ;;  %v18_v15 = vld [vmem:[%s1750_s0 + $0x30] sm:$0xff] }
 0x13b   :  { %1310 = vmatmul.mubr.msk.f32.vlgmr.msra.gmra.mxu1 %vm103_vm2, %v14_v8  ;;  %1312 = vmatprep.subr.mxu1 %v1493_v4  ;;  %v658_v8 = vld [vmem:[%s1751_s1 + $0x60] sm:$0xff] }
 0x13c   :  { %1313 = vmatpush3.msra.mxu1 %v93_v6  ;;  %1314 = vmatprep.mubr.msk.f32.mxu1 %vm1494_vm1, %v1493_v4  ;;  %v576_v6 = vld [vmem:[%s1751_s1 + $0x2b0] sm:$0xff] }
 0x13d   :  { %v252_v16 = vpop.permute.xlu0 %251  ;;  %1322 = vmatprep.subr.mxu1 %v1493_v4 }
 0x13e   :  { %1318 = vmatpush3.msra.mxu0 %v252_v16 }
 0x13f   :  { %1315 = vmatmul.mubr.msk.f32.vlgmr.msra.gmra.mxu1 %vm103_vm2, %v13_v7  ;;  %1320 = vmatmul.mubr.msk.f32.vlgmr.msra.gmra.mxu0 %vm103_vm2, %v15_v10  ;;  %v659_v7 = vld [vmem:[%s1751_s1 + $0x70] sm:$0xff] }
 0x140   :  { %1323 = vmatpush3.msra.mxu1 %v330_v17  ;;  %1324 = vmatprep.mubr.msk.f32.mxu1 %vm1494_vm1, %v1493_v4  ;;  %v17_v17 = vld [vmem:[%s1750_s0 + $0x28] sm:$0xff] }
 0x141   :  { %492 = vmatprep.mubr.f32.mxu0 %v1493_v4  ;;  %1327 = vmatprep.subr.mxu1 %v1493_v4 }
 0x142   :  { %452 = vmatprep.subr.mxu0 %v423_v18 }
 0x143   :  { %1325 = vmatmul.mubr.msk.f32.vlgmr.msra.gmra.mxu1 %vm103_vm2, %v16_v12  ;;  %453 = vmatpush1.msra.mxu0 %v422_v19 }
 0x144   :  { %1329 = vmatprep.mubr.msk.f32.mxu1 %vm1494_vm1, %v1493_v4  ;;  %454 = vmatprep.subr.mxu0 %v421_v20 }
 0x145   :  { %455 = vmatpush1.msra.mxu0 %v420_v21 }
 0x146   :  { %456 = vmatprep.subr.mxu0 %v419_v22 }
 0x147   :  { %457 = vmatpush1.msra.mxu0 %v418_v23 }
 0x148   :  { %458 = vmatprep.subr.mxu0 %v417_v24 }
 0x149   :  { %459 = vmatpush1.msra.mxu0 %v416_v25 }
 0x14a   :  { %1337 = vmatprep.subr.mxu0 %v673_v47 }
 0x174   :  { %v408_v26 = vpop.xlane.xlu1 %407 }
 0x175   :  { %v409_v27 = vmax.f32 %v408_v26, 1.0 }
 0x177   :  { %1445 = vrcp.f32 %v409_v27 }
 0x184   :  { %v1446_v37 = vpop.eup %1445 }
 0x1fb   :  { %v173_v28 = vpop.f32.mrf.mxu1 }
 0x1fd   :  { %v1311_v30 = vpop.f32.mrf.mxu1 }
 0x1ff   :  { %v246_v31 = vpop.f32.mrf.mxu1  ;;  %v323_v32 = vpop.f32.mrf.mxu0 }
 0x200   :  { %v247_v33 = vadd.f32 %v246_v31, %v173_v28 }
 0x201   :  { %v1316_v34 = vpop.f32.mrf.mxu1  ;;  %v1321_v35 = vpop.f32.mrf.mxu0 }
 0x202   :  { %v327_v36 = vadd.f32 %v323_v32, %v247_v33 }
 0x203   :  { %v401_v38 = vpop.f32.mrf.mxu1 }
 0x204   :  { %v405_v39 = vadd.f32 %v401_v38, %v327_v36 }
 0x205   :  { %v1326_v40 = vpop.f32.mrf.mxu1 }
 0x206   :  { %v412_v41 = vmul.f32 %v1446_v37, %v405_v39  ;;  %v951_v39 = vld [vmem:[%s1751_s1 + $0x250] sm:$0xff] }
 0x208   :  { %v413_v43 = vadd.f32 %v412_v41, %v95_v29 }
 0x20a   :  { %v415_v44 = vadd.f32 %v414_v42, %v413_v43 }
 0x20c   :  { %1232 = vmatmul.mubr.msk.f32.vlgmr.msra.gmra.mxu0 %vm424_vm3, %v415_v44 }
 0x20d   :  { %1338 = vmatpush3.msra.mxu0 %v673_v47  ;;  %v949_v47 = vld [vmem:[%s1751_s1 + $0x230] sm:$0xff] }
 0x20e   :  { %1339 = vmatprep.subr.mxu0 %v672_v48 }
 0x20f   :  { %1340 = vmatpush3.msra.mxu0 %v672_v48  ;;  %v948_v48 = vld [vmem:[%s1751_s1 + $0x220] sm:$0xff] }
 0x210   :  { %1341 = vmatprep.subr.mxu0 %v671_v49 }
 0x211   :  { %1342 = vmatpush3.msra.mxu0 %v671_v49  ;;  %v947_v49 = vld [vmem:[%s1751_s1 + $0x210] sm:$0xff] }
 0x212   :  { %1343 = vmatprep.subr.mxu0 %v670_v50 }
 0x213   :  { %1344 = vmatpush3.msra.mxu0 %v670_v50  ;;  %v946_v50 = vld [vmem:[%s1751_s1 + $0x200] sm:$0xff] }
 0x214   :  { %1345 = vmatprep.subr.mxu0 %v669_v51 }
 0x215   :  { %1346 = vmatpush3.msra.mxu0 %v669_v51  ;;  %v945_v51 = vld [vmem:[%s1751_s1 + $0x1f0] sm:$0xff] }
 0x216   :  { %1347 = vmatprep.subr.mxu0 %v668_v52 }
 0x217   :  { %1348 = vmatpush3.msra.mxu0 %v668_v52  ;;  %v944_v52 = vld [vmem:[%s1751_s1 + $0x1e0] sm:$0xff] }
 0x218   :  { %1349 = vmatprep.subr.mxu0 %v667_v53 }
 0x219   :  { %1350 = vmatpush3.msra.mxu0 %v667_v53  ;;  %v943_v53 = vld [vmem:[%s1751_s1 + $0x1d0] sm:$0xff] }
 0x21a   :  { %1351 = vmatprep.subr.mxu0 %v666_v54 }
 0x21b   :  { %1352 = vmatpush3.msra.mxu0 %v666_v54  ;;  %v942_v54 = vld [vmem:[%s1751_s1 + $0x1c0] sm:$0xff] }
 0x21c   :  { %1353 = vmatprep.subr.mxu0 %v665_v55 }
 0x21d   :  { %1354 = vmatpush3.msra.mxu0 %v665_v55  ;;  %v941_v55 = vld [vmem:[%s1751_s1 + $0x1b0] sm:$0xff] }
 0x21e   :  { %1355 = vmatprep.subr.mxu0 %v664_v56 }
 0x21f   :  { %1356 = vmatpush3.msra.mxu0 %v664_v56  ;;  %v940_v56 = vld [vmem:[%s1751_s1 + $0x1a0] sm:$0xff] }
 0x220   :  { %1357 = vmatprep.subr.mxu0 %v663_v57 }
 0x221   :  { %1358 = vmatpush3.msra.mxu0 %v663_v57  ;;  %v939_v57 = vld [vmem:[%s1751_s1 + $0x190] sm:$0xff] }
 0x222   :  { %1359 = vmatprep.subr.mxu0 %v662_v58 }
 0x223   :  { %1360 = vmatpush3.msra.mxu0 %v662_v58  ;;  %v938_v58 = vld [vmem:[%s1751_s1 + $0x180] sm:$0xff] }
 0x224   :  { %1361 = vmatprep.subr.mxu0 %v661_v59 }
 0x225   :  { %1362 = vmatpush3.msra.mxu0 %v661_v59  ;;  %v937_v59 = vld [vmem:[%s1751_s1 + $0x170] sm:$0xff] }
 0x226   :  { %1363 = vmatprep.subr.mxu0 %v660_v60 }
 0x227   :  { %1364 = vmatpush3.msra.mxu0 %v660_v60  ;;  %v936_v60 = vld [vmem:[%s1751_s1 + $0x160] sm:$0xff] }
 0x228   :  { %1365 = vmatprep.subr.mxu0 %v659_v7 }
 0x229   :  { %1366 = vmatpush3.msra.mxu0 %v659_v7 }
 0x22a   :  { %1367 = vmatprep.subr.mxu0 %v658_v8 }
 0x22b   :  { %1368 = vmatpush3.msra.mxu0 %v658_v8 }
 0x2cc   :  { %v494_v45 = vpop.f32.mrf.mxu0 }
 0x2cd   :  { %1328 = vmatpush3.msra.mxu1 %v494_v45 }
 0x2ce   :  { %1330 = vmatmul.mubr.msk.f32.vlgmr.msra.gmra.mxu1 %vm103_vm2, %v328_v13  ;;  %v496_v61 = vpop.f32.mrf.mxu0 }
 0x2cf   :  { %1334 = vmatprep.mubr.msk.f32.mxu1 %vm103_vm2, %v575_v46  ;;  %v950_v46 = vld [vmem:[%s1751_s1 + $0x240] sm:$0xff] }
 0x38e   :  { %v568_v62 = vpop.f32.mrf.mxu1 }
 0x38f   :  { %v569_v0 = vadd.f32 %v568_v62, %v496_v61 }
 0x390   :  { %v1331_v1 = vpop.f32.mrf.mxu1 }
 0x391   :  { %v573_v2 = vadd.f32 %v572_v63, %v569_v0  ;;  %v1033_v63 = vld [vmem:[%s1751_s1 + $0x290] sm:$0xff]  ;;  %v1032_v0 = vld [vmem:[%s1751_s1 + $0x280] sm:$0xff] }
 0x392   :  { %1421 = vmatprep.subr.mxu0 %v1033_v63  ;;  %v1031_v1 = vld [vmem:[%s1751_s1 + $0x270] sm:$0xff] }
 0x393   :  { %v574_v3 = vadd.f32 %v573_v2, %v1530_v5  ;;  %v1030_v2 = vld [vmem:[%s1751_s1 + $0x260] sm:$0xff] }
 0x395   :  { %1332 = vmatprep.subr.mxu1 %v574_v3 }
 0x396   :  { %1333 = vmatpush3.msra.mxu1 %v574_v3  ;;  %v952_v3 = vld [vmem:[%s1751_s1 + $0x300] ss:$0 sm:$0xff] }
 0x397   :  { %1335 = vmatmul.mubr.msk.f32.vlgmr.msra.gmra.mxu1 %vm103_vm2, %v576_v6 }
 0x457   :  { %v1336_v5 = vpop.f32.mrf.mxu1 }
 0x458   :  { %1372 = vmatprep.subr.mxu1 %v1336_v5 }
 0x459   :  { %v649_v9 = vpop.f32.mrf.mxu1  ;;  %1373 = vmatpush3.xpose.msra.mxu1 %v1336_v5 }
 0x45a   :  { %1369 = vmatprep.mubr.f32.mxu0 %v649_v9  ;;  %1374 = vmatprep.subr.mxu1 %v649_v9 }
 0x45b   :  { %1370 = vmatmul.mubr.f32.vlgmr.msra.gmra.mxu0 %v1336_v5 }
 0x45c   :  { %1422 = vmatpush3.msra.mxu0 %v1033_v63 }
 0x45d   :  { %1375 = vmatpush3.xpose.msra.mxu1 %v649_v9  ;;  %1423 = vmatprep.subr.mxu0 %v1032_v0 }
 0x45e   :  { %1379 = vmatprep.subr.mxu1 %v1336_v5  ;;  %1424 = vmatpush3.msra.mxu0 %v1032_v0 }
 0x45f   :  { %1425 = vmatprep.subr.mxu0 %v1031_v1 }
 0x460   :  { %1426 = vmatpush3.msra.mxu0 %v1031_v1 }
 0x461   :  { %1427 = vmatprep.subr.mxu0 %v1030_v2 }
 0x462   :  { %1428 = vmatpush3.msra.mxu0 %v1030_v2 }
 0x463   :  { %1432 = vmatprep.subr.mxu0 %v1493_v4 }
 0x51b   :  { %v1371_v10 = vpop.f32.mrf.mxu0 }
 0x51c   :  { %v747_v14 = vadd.f32 %v1371_v10, %v674_v11 }
 0x51d   :  { %v741_v12 = vpop.f32.mrf.mxu0 }
 0x51e   :  { %v742_v13 = vadd.f32 %v741_v12, %v674_v11  ;;  %v1034_v11 = vld [vmem:[%s1751_s1 + $0x310] ss:$0 sm:$0xff] }
 0x520   :  { %1376 = vmatprep.mubr.f32.mxu1 %v742_v13 }
 0x521   :  { %1377 = vmatmul.mubr.f32.vlgmr.msra.gmra.mxu1 %v747_v14 }
 0x522   :  { %1380 = vmatpush3.msra.mxu1 %v1336_v5 }
 0x523   :  { %1381 = vmatprep.subr.mxu1 %v649_v9 }
 0x524   :  { %1382 = vmatpush3.msra.mxu1 %v649_v9 }
 0x525   :  { %1386 = vmatprep.subr.mxu1 %v951_v39 }
 0x5e1   :  { %v1378_v16 = vpop.f32.mrf.mxu1 }
 0x5e2   :  { %v826_v18 = vmul.f32 %v1378_v16, %v18_v15 }
 0x5e3   :  { %v816_v19 = vpop.f32.mrf.mxu1 }
 0x5e4   :  { %1447 = vtanh.f32 %v826_v18  ;;  %v825_v20 = vmul.f32 %v816_v19, %v17_v17 }
 0x5e6   :  { %1449 = vtanh.f32 %v825_v20 }
 0x5f1   :  { %v1448_v21 = vpop.eup %1447 }
 0x5f2   :  { %v831_v23 = vmul.f32 1.442695, %v1448_v21 }
 0x5f3   :  { %v1450_v22 = vpop.eup %1449 }
 0x5f4   :  { %v829_v24 = vmul.f32 1.442695, %v1450_v22 }
 0x5f6   :  { %1451 = vpow2.f32 %v829_v24 }
 0x5f7   :  { %1453 = vpow2.f32 %v831_v23 }
 0x603   :  { %v1452_v25 = vpop.eup %1451 }
 0x604   :  { %v833_v26 = vsel %vm23_vm0, %v1452_v25, 0.0  ;;  %v1454_v27 = vpop.eup %1453 }
 0x605   :  { %834 = vadd.xlane.f32.xlu0 %v833_v26  ;;  %v836_v28 = vsel %vm23_vm0, %v1454_v27, 0.0 }
 0x609   :  { %837 = vadd.xlane.f32.xlu0 %v836_v28 }
 0x68e   :  { %v835_v29 = vpop.xlane.xlu0 %834 }
 0x68f   :  { %1455 = vrcp.f32 %v835_v29 }
 0x692   :  { %v838_v30 = vpop.xlane.xlu0 %837 }
 0x693   :  { %1457 = vrcp.f32 %v838_v30 }
 0x69c   :  { %v1456_v31 = vpop.eup %1455 }
 0x69d   :  { %v841_v32 = vmul.f32 %v1456_v31, %v1452_v25 }
 0x69f   :  { %v843_v33 = vmul.f32 %v841_v32, %v17_v17 }
 0x6a0   :  { %v1458_v34 = vpop.eup %1457 }
 0x6a1   :  { %v845_v35 = vsel %vm23_vm0, %v843_v33, 0.0  ;;  %v842_v36 = vmul.f32 %v1458_v34, %v1454_v27  ;;  %v1138_v34 = vld [vmem:[%s1751_s1 + $0x2c0] sm:$0xff] }
 0x6a2   :  { %846 = vadd.xlane.f32.xlu1 %v845_v35 }
 0x6a3   :  { %v844_v37 = vmul.f32 %v842_v36, %v18_v15 }
 0x6a5   :  { %v848_v38 = vsel %vm23_vm0, %v844_v37, 0.0 }
 0x6a6   :  { %849 = vadd.xlane.f32.xlu0 %v848_v38 }
 0x72b   :  { %v847_v40 = vpop.xlane.xlu1 %846 }
 0x72c   :  { %1459 = vrcp.f32 %v847_v40 }
 0x72f   :  { %v850_v41 = vpop.xlane.xlu0 %849 }
 0x730   :  { %1461 = vrcp.f32 %v850_v41 }
 0x739   :  { %v1460_v42 = vpop.eup %1459 }
 0x73a   :  { %v852_v43 = vmul.f32 %v1460_v42, %v843_v33 }
 0x73c   :  { %1383 = vmatprep.mubr.msk.f32.mxu1 %vm23_vm0, %v852_v43 }
 0x73d   :  { %v1462_v44 = vpop.eup %1461 }
 0x73e   :  { %v854_v45 = vmul.f32 %v1462_v44, %v844_v37 }
 0x740   :  { %1384 = vmatmul.mubr.msk.f32.vlgmr.msra.gmra.mxu1 %vm23_vm0, %v854_v45 }
 0x741   :  { %1387 = vmatpush3.msra.mxu1 %v951_v39 }
 0x742   :  { %1388 = vmatprep.subr.mxu1 %v950_v46 }
 0x743   :  { %1389 = vmatpush3.msra.mxu1 %v950_v46 }
 0x744   :  { %1390 = vmatprep.subr.mxu1 %v949_v47 }
 0x745   :  { %1391 = vmatpush3.msra.mxu1 %v949_v47 }
 0x746   :  { %1392 = vmatprep.subr.mxu1 %v948_v48 }
 0x747   :  { %1393 = vmatpush3.msra.mxu1 %v948_v48 }
 0x748   :  { %1394 = vmatprep.subr.mxu1 %v947_v49 }
 0x749   :  { %1395 = vmatpush3.msra.mxu1 %v947_v49 }
 0x74a   :  { %1396 = vmatprep.subr.mxu1 %v946_v50 }
 0x74b   :  { %1397 = vmatpush3.msra.mxu1 %v946_v50 }
 0x74c   :  { %1398 = vmatprep.subr.mxu1 %v945_v51 }
 0x74d   :  { %1399 = vmatpush3.msra.mxu1 %v945_v51 }
 0x74e   :  { %1400 = vmatprep.subr.mxu1 %v944_v52 }
 0x74f   :  { %1401 = vmatpush3.msra.mxu1 %v944_v52 }
 0x750   :  { %1402 = vmatprep.subr.mxu1 %v943_v53 }
 0x751   :  { %1403 = vmatpush3.msra.mxu1 %v943_v53 }
 0x752   :  { %1404 = vmatprep.subr.mxu1 %v942_v54 }
 0x753   :  { %1405 = vmatpush3.msra.mxu1 %v942_v54 }
 0x754   :  { %1406 = vmatprep.subr.mxu1 %v941_v55 }
 0x755   :  { %1407 = vmatpush3.msra.mxu1 %v941_v55 }
 0x756   :  { %1408 = vmatprep.subr.mxu1 %v940_v56 }
 0x757   :  { %1409 = vmatpush3.msra.mxu1 %v940_v56 }
 0x758   :  { %1410 = vmatprep.subr.mxu1 %v939_v57 }
 0x759   :  { %1411 = vmatpush3.msra.mxu1 %v939_v57 }
 0x75a   :  { %1412 = vmatprep.subr.mxu1 %v938_v58 }
 0x75b   :  { %1413 = vmatpush3.msra.mxu1 %v938_v58 }
 0x75c   :  { %1414 = vmatprep.subr.mxu1 %v937_v59 }
 0x75d   :  { %1415 = vmatpush3.msra.mxu1 %v937_v59 }
 0x75e   :  { %1416 = vmatprep.subr.mxu1 %v936_v60 }
 0x75f   :  { %1417 = vmatpush3.msra.mxu1 %v936_v60 }
 0x800   :  { %v1385_v61 = vpop.f32.mrf.mxu1 }
 0x802   :  { %v927_v62 = vpop.f32.mrf.mxu1 }
 0x803   :  { %1418 = vmatprep.mubr.f32.mxu1 %v927_v62 }
 0x804   :  { %1419 = vmatmul.mubr.f32.vlgmr.msra.gmra.mxu1 %v1385_v61 }
 0x8c4   :  { %v1420_v6 = vpop.f32.mrf.mxu1 }
 0x8c5   :  { %v1025_v7 = vadd.f32 %v1420_v6, %v952_v3 }
 0x8c6   :  { %v1019_v8 = vpop.f32.mrf.mxu1 }
 0x8c7   :  { %v1020_v5 = vadd.f32 %v1019_v8, %v952_v3  ;;  %v1029_v10 = vmax.f32 %v1025_v7, 0.0 }
 0x8c9   :  { %v1028_v9 = vmax.f32 %v1020_v5, 0.0 }
 0x8cb   :  { %1429 = vmatprep.mubr.msk.f32.mxu0 %vm424_vm3, %v1028_v9 }
 0x8cc   :  { %1430 = vmatmul.mubr.msk.f32.vlgmr.msra.gmra.mxu0 %vm424_vm3, %v1029_v10 }
 0x8cd   :  { %1436 = vmatprep.mubr.msk.f32.mxu0 %vm1494_vm1, %v1493_v4 }
 0x98c   :  { %v1431_v12 = vpop.f32.mrf.mxu0 }
 0x98d   :  { %v1113_v13 = vadd.f32 %v1431_v12, %v1034_v11 }
 0x98e   :  { %v1107_v14 = vpop.f32.mrf.mxu0 }
 0x98f   :  { %v1108_v15 = vadd.f32 %v1107_v14, %v1034_v11  ;;  %1118 = vmax.xlane.f32.xlu1 %v1113_v13 }
 0x991   :  { %1116 = vmax.xlane.f32.xlu0 %v1108_v15 }
 0xa18   :  { %v1119_v16 = vpop.xlane.xlu1 %1118 }
 0xa19   :  { %v1121_v17 = vsub.f32 %v1113_v13, %v1119_v16 }
 0xa1a   :  { %v1117_v18 = vpop.xlane.xlu0 %1116 }
 0xa1b   :  { %v1124_v19 = vmul.f32 1.442695, %v1121_v17  ;;  %v1120_v20 = vsub.f32 %v1108_v15, %v1117_v18 }
 0xa1d   :  { %1463 = vpow2.f32 %v1124_v19  ;;  %v1122_v21 = vmul.f32 1.442695, %v1120_v20 }
 0xa1f   :  { %1465 = vpow2.f32 %v1122_v21 }
 0xa2a   :  { %v1464_v22 = vpop.eup %1463 }
 0xa2b   :  { %1128 = vadd.xlane.f32.xlu1 %v1464_v22 }
 0xa2c   :  { %v1466_v23 = vpop.eup %1465 }
 0xa2d   :  { %1126 = vadd.xlane.f32.xlu0 %v1466_v23 }
 0xab4   :  { %v1129_v24 = vpop.xlane.xlu1 %1128 }
 0xab5   :  { %1467 = vlog2.f32 %v1129_v24 }
 0xab6   :  { %v1127_v25 = vpop.xlane.xlu0 %1126 }
 0xab7   :  { %1469 = vlog2.f32 %v1127_v25 }
 0xac2   :  { %v1468_v26 = vpop.eup %1467 }
 0xac3   :  { %v1133_v27 = vmul.f32 0.6931472, %v1468_v26 }
 0xac4   :  { %v1470_v28 = vpop.eup %1469 }
 0xac5   :  { %v1135_v29 = vadd.f32 %v1133_v27, %v1119_v16  ;;  %v1131_v30 = vmul.f32 0.6931472, %v1470_v28 }
 0xac7   :  { %v1137_v31 = vsub.f32 %v1113_v13, %v1135_v29  ;;  %v1134_v32 = vadd.f32 %v1131_v30, %v1117_v18 }
 0xac9   :  { %v1136_v33 = vsub.f32 %v1108_v15, %v1134_v32  ;;  %1433 = vmatpush3.msra.mxu0 %v1137_v31 }
 0xaca   :  { %1434 = vmatprep.subr.mxu0 %v1493_v4 }
 0xacb   :  { %1435 = vmatpush3.msra.mxu0 %v1136_v33 }
 0xacc   :  { %1437 = vmatmul.mubr.msk.f32.vlgmr.msra.gmra.mxu0 %vm23_vm0, %v1138_v34 }
 0xb8c   :  { %v1208_v35 = vpop.f32.mrf.mxu0 }
 0xb8d   :  { %1212 = vst [vmem:[#allocation2] sm:$0xff] %v1208_v35 }
 0xb8e   :  { %v1438_v36 = vpop.f32.mrf.mxu0 }
 0xb8f   :  { %1482 = shalt.err (!%p1479_p4)
}
 0xb90   :  { %1222 = dma.vmem_to_hbm [thread:$0]  %s1220_s25, 128, %s1752_s2, [#allocation3]  }
 0xb91   :  { %1491 = dma.done.wait [#allocation3], 128  }
 0xb92   :  { %1492 = vsyncadd [#allocation3], 4294967168 }
 0xb93   :  { %1226 = vsyncpa [#allocation3], 1 }

</bundles_post_ra>
